<compile_context>
chip_gen: v7x
topology: tpu7x:2x2x1
jax: 0.10.0
libtpu: 0.0.40
codegen_flags: <defaults>
</compile_context>

<pallas_src>
import jax
import jax.numpy as jnp
from jax.experimental import pallas as pl
from jax.experimental.pallas import tpu as pltpu


def mlp_kernel(x_ref, w1_ref, b1_ref, w2_ref, b2_ref, w3_ref, b3_ref, out_ref):
    # Layer 1: Linear(D, H1) + ReLU   (weights pre-transposed: h = x @ W1^T + b1)
    h = jnp.dot(x_ref[...], w1_ref[...], preferred_element_type=jnp.float32) + b1_ref[...]
    h = jnp.maximum(h, 0.0)
    # Layer 2: Linear(H1, H2) + ReLU
    h = jnp.dot(h, w2_ref[...], preferred_element_type=jnp.float32) + b2_ref[...]
    h = jnp.maximum(h, 0.0)
    # Output layer: Linear(H2, O)
    out = jnp.dot(h, w3_ref[...], preferred_element_type=jnp.float32) + b3_ref[...]
    out_ref[...] = out.astype(out_ref.dtype)


def _round_up(n, m):
    return ((n + m - 1) // m) * m


def _flatten_like_torch(x):
    """Replicates MLPPreparationFunction.forward's reshaping."""
    if x.ndim == 2:
        return x.reshape(1, -1)          # x.view(-1).unsqueeze(0)
    elif x.ndim > 2:
        return x.reshape(x.shape[0], -1)  # x.view(x.size(0), -1)
    else:
        return x.reshape(1, -1)           # 1-D input: treat as a single row


def mlp_preparation_forward(x, params, *, batch_tile=256):
    """Fused MLP forward. Returns [B, output_size] (B per torch flatten semantics)."""
    x2 = _flatten_like_torch(x).astype(jnp.float32)
    w1, b1 = params["w1"], params["b1"]
    w2, b2 = params["w2"], params["b2"]
    w3, b3 = params["w3"], params["b3"]

    B, D = x2.shape
    H1 = w1.shape[1]
    H2 = w2.shape[1]
    O = w3.shape[1]
    assert D == w1.shape[0], f"flattened input size {D} != input_shape {w1.shape[0]}"

    # Batch tile: a sublane multiple, capped at `batch_tile` rows per grid step.
    TB = min(batch_tile, _round_up(B, 8))
    B_pad = _round_up(B, TB)
    if B_pad != B:
        x2 = jnp.pad(x2, ((0, B_pad - B), (0, 0)))

    grid = (B_pad // TB,)

    out = pl.pallas_call(
        mlp_kernel,
        out_shape=jax.ShapeDtypeStruct((B_pad, O), jnp.float32),
        grid_spec=pltpu.PrefetchScalarGridSpec(
            num_scalar_prefetch=0,
            grid=grid,
            in_specs=[
                pl.BlockSpec((TB, D), lambda i: (i, 0)),   # x tile (only tiled input)
                pl.BlockSpec((D, H1), lambda i: (0, 0)),   # W1^T   (grid-invariant)
                pl.BlockSpec((1, H1), lambda i: (0, 0)),   # b1
                pl.BlockSpec((H1, H2), lambda i: (0, 0)),  # W2^T
                pl.BlockSpec((1, H2), lambda i: (0, 0)),   # b2
                pl.BlockSpec((H2, O), lambda i: (0, 0)),   # W3^T
                pl.BlockSpec((1, O), lambda i: (0, 0)),    # b3
            ],
            out_specs=pl.BlockSpec((TB, O), lambda i: (i, 0)),
        ),
        compiler_params=pltpu.CompilerParams(
            dimension_semantics=("parallel",)),
    )(x2, w1, b1, w2, b2, w3, b3)

    return out[:B]


def make_params(key, input_shape, hidden_layer_sizes, output_size):
    """kaiming_uniform_(nonlinearity='relu') weights (bound sqrt(6/fan_in)), zero biases.

    Weights are stored pre-transposed as [fan_in, fan_out] so the kernel does x @ W.
    """
    sizes = [input_shape] + list(hidden_layer_sizes) + [output_size]
    keys = jax.random.split(key, len(sizes) - 1)
    params = {}
    for idx, (fan_in, fan_out) in enumerate(zip(sizes[:-1], sizes[1:]), start=1):
        bound = jnp.sqrt(6.0 / fan_in)  # gain(relu)=sqrt(2), * sqrt(3/fan_in)
        params[f"w{idx}"] = jax.random.uniform(
            keys[idx - 1], (fan_in, fan_out), jnp.float32, -bound, bound)
        params[f"b{idx}"] = jnp.zeros((1, fan_out), jnp.float32)
    return params


def reference_forward(x, params):
    """Pure-JAX reference matching the PyTorch forward (full f32 matmul precision)."""
    x2 = _flatten_like_torch(x).astype(jnp.float32)
    hp = jax.lax.Precision.HIGHEST
    h = jax.nn.relu(jnp.dot(x2, params["w1"], precision=hp) + params["b1"])
    h = jax.nn.relu(jnp.dot(h, params["w2"], precision=hp) + params["b2"])
    return jnp.dot(h, params["w3"], precision=hp) + params["b3"]


if __name__ == "__main__":
    # Small shapes consistent with the module: x [2, 4, 16, 16] flattens to [2, 1024].
    B, C, Hs, Ws = 2, 4, 16, 16
    input_shape = C * Hs * Ws          # 1024
    hidden_layer_sizes = [64, 64]
    output_size = 8

    key = jax.random.PRNGKey(0)
    k_params, k_x, k_x2d = jax.random.split(key, 3)
    params = make_params(k_params, input_shape, hidden_layer_sizes, output_size)

    # Case 1: dim > 2  ->  flatten per sample.
    x = jax.random.normal(k_x, (B, C, Hs, Ws), dtype=jnp.float32)
    out = jax.block_until_ready(mlp_preparation_forward(x, params))
    ref = reference_forward(x, params)
    assert out.shape == (B, output_size)
    assert jnp.allclose(out, ref, atol=1e-2, rtol=1e-2), (
        f"max abs err = {jnp.max(jnp.abs(out - ref))}")

    # Case 2: dim == 2  ->  whole tensor flattened into a single row.
    x2d = jax.random.normal(k_x2d, (32, 32), dtype=jnp.float32)   # 32*32 = input_shape
    out2 = jax.block_until_ready(mlp_preparation_forward(x2d, params))
    ref2 = reference_forward(x2d, params)
    assert out2.shape == (1, output_size)
    assert jnp.allclose(out2, ref2, atol=1e-2, rtol=1e-2), (
        f"max abs err = {jnp.max(jnp.abs(out2 - ref2))}")

    print("KERNEL_OK")
</pallas_src>

<mosaic_0001>
module attributes {stable_mosaic.version = 11 : i64} {
  func.func @mlp_kernel(%arg0: i32, %arg1: memref<8x1024xf32, #tpu.memory_space<vmem>>, %arg2: memref<1024x64xf32, #tpu.memory_space<vmem>>, %arg3: memref<1x64xf32, #tpu.memory_space<vmem>>, %arg4: memref<64x64xf32, #tpu.memory_space<vmem>>, %arg5: memref<1x64xf32, #tpu.memory_space<vmem>>, %arg6: memref<64x8xf32, #tpu.memory_space<vmem>>, %arg7: memref<1x8xf32, #tpu.memory_space<vmem>>, %arg8: memref<8x8xf32, #tpu.memory_space<vmem>>) attributes {dimension_semantics = [#tpu.dimension_semantics<parallel>], iteration_bounds = array<i64: 1>, scalar_prefetch = 0 : i64, scratch_operands = 0 : i64, tpu.core_type = #tpu.core_type<tc>, window_params = [{transform_indices = @transform_0, window_bounds = array<i64: 8, 1024>}, {pipeline_mode = #tpu.pipeline_mode<synchronous>, transform_indices = @transform_1, window_bounds = array<i64: 1024, 64>}, {pipeline_mode = #tpu.pipeline_mode<synchronous>, transform_indices = @transform_2, window_bounds = array<i64: 1, 64>}, {pipeline_mode = #tpu.pipeline_mode<synchronous>, transform_indices = @transform_3, window_bounds = array<i64: 64, 64>}, {pipeline_mode = #tpu.pipeline_mode<synchronous>, transform_indices = @transform_4, window_bounds = array<i64: 1, 64>}, {pipeline_mode = #tpu.pipeline_mode<synchronous>, transform_indices = @transform_5, window_bounds = array<i64: 64, 8>}, {pipeline_mode = #tpu.pipeline_mode<synchronous>, transform_indices = @transform_6, window_bounds = array<i64: 1, 8>}, {transform_indices = @transform_7, window_bounds = array<i64: 8, 8>}]} {
    %c0 = arith.constant 0 : index
    %c0_0 = arith.constant 0 : index
    %0 = vector.load %arg1[%c0, %c0_0] : memref<8x1024xf32, #tpu.memory_space<vmem>>, vector<8x1024xf32>
    %c0_1 = arith.constant 0 : index
    %c0_2 = arith.constant 0 : index
    %1 = vector.load %arg2[%c0_1, %c0_2] : memref<1024x64xf32, #tpu.memory_space<vmem>>, vector<1024x64xf32>
    %cst = arith.constant dense<0.000000e+00> : vector<8x64xf32>
    %2 = tpu.matmul %0, %1, %cst {dimension_numbers = #tpu.dot_dimension_numbers<[1], [0], [0], [1], [0, 0, 1, 1], [], []>} : vector<8x1024xf32>, vector<1024x64xf32>, vector<8x64xf32> -> vector<8x64xf32>
    %c0_3 = arith.constant 0 : index
    %c0_4 = arith.constant 0 : index
    %3 = vector.load %arg3[%c0_3, %c0_4] : memref<1x64xf32, #tpu.memory_space<vmem>>, vector<1x64xf32>
    %4 = vector.broadcast %3 : vector<1x64xf32> to vector<8x64xf32>
    %5 = arith.addf %2, %4 : vector<8x64xf32>
    %cst_5 = arith.constant 0.000000e+00 : f32
    %6 = vector.broadcast %cst_5 : f32 to vector<8x64xf32>
    %7 = arith.maximumf %5, %6 : vector<8x64xf32>
    %c0_6 = arith.constant 0 : index
    %c0_7 = arith.constant 0 : index
    %8 = vector.load %arg4[%c0_6, %c0_7] : memref<64x64xf32, #tpu.memory_space<vmem>>, vector<64x64xf32>
    %cst_8 = arith.constant dense<0.000000e+00> : vector<8x64xf32>
    %9 = tpu.matmul %7, %8, %cst_8 {dimension_numbers = #tpu.dot_dimension_numbers<[1], [0], [0], [1], [0, 0, 1, 1], [], []>} : vector<8x64xf32>, vector<64x64xf32>, vector<8x64xf32> -> vector<8x64xf32>
    %c0_9 = arith.constant 0 : index
    %c0_10 = arith.constant 0 : index
    %10 = vector.load %arg5[%c0_9, %c0_10] : memref<1x64xf32, #tpu.memory_space<vmem>>, vector<1x64xf32>
    %11 = vector.broadcast %10 : vector<1x64xf32> to vector<8x64xf32>
    %12 = arith.addf %9, %11 : vector<8x64xf32>
    %cst_11 = arith.constant 0.000000e+00 : f32
    %13 = vector.broadcast %cst_11 : f32 to vector<8x64xf32>
    %14 = arith.maximumf %12, %13 : vector<8x64xf32>
    %c0_12 = arith.constant 0 : index
    %c0_13 = arith.constant 0 : index
    %15 = vector.load %arg6[%c0_12, %c0_13] : memref<64x8xf32, #tpu.memory_space<vmem>>, vector<64x8xf32>
    %cst_14 = arith.constant dense<0.000000e+00> : vector<8x8xf32>
    %16 = tpu.matmul %14, %15, %cst_14 {dimension_numbers = #tpu.dot_dimension_numbers<[1], [0], [0], [1], [0, 0, 1, 1], [], []>} : vector<8x64xf32>, vector<64x8xf32>, vector<8x8xf32> -> vector<8x8xf32>
    %c0_15 = arith.constant 0 : index
    %c0_16 = arith.constant 0 : index
    %17 = vector.load %arg7[%c0_15, %c0_16] : memref<1x8xf32, #tpu.memory_space<vmem>>, vector<1x8xf32>
    %18 = vector.broadcast %17 : vector<1x8xf32> to vector<8x8xf32>
    %19 = arith.addf %16, %18 : vector<8x8xf32>
    %c0_17 = arith.constant 0 : index
    %c0_18 = arith.constant 0 : index
    %20 = vector.load %arg8[%c0_17, %c0_18] : memref<8x8xf32, #tpu.memory_space<vmem>>, vector<8x8xf32>
    tpu.vector_store %arg8[%c0_17, %c0_18], %19 {strides = array<i32>} : memref<8x8xf32, #tpu.memory_space<vmem>>, vector<8x8xf32>,
    return
  }
  func.func @transform_0(%arg0: i32) -> (i32, i32) {
    %c0_i32 = arith.constant 0 : i32
    %c0_i32_0 = arith.constant 0 : i32
    return %arg0, %c0_i32 : i32, i32
  }
  func.func @transform_1(%arg0: i32) -> (i32, i32) {
    %c0_i32 = arith.constant 0 : i32
    %c0_i32_0 = arith.constant 0 : i32
    %c0_i32_1 = arith.constant 0 : i32
    return %c0_i32, %c0_i32_0 : i32, i32
  }
  func.func @transform_2(%arg0: i32) -> (i32, i32) {
    %c0_i32 = arith.constant 0 : i32
    %c0_i32_0 = arith.constant 0 : i32
    %c0_i32_1 = arith.constant 0 : i32
    return %c0_i32, %c0_i32_0 : i32, i32
  }
  func.func @transform_3(%arg0: i32) -> (i32, i32) {
    %c0_i32 = arith.constant 0 : i32
    %c0_i32_0 = arith.constant 0 : i32
    %c0_i32_1 = arith.constant 0 : i32
    return %c0_i32, %c0_i32_0 : i32, i32
  }
  func.func @transform_4(%arg0: i32) -> (i32, i32) {
    %c0_i32 = arith.constant 0 : i32
    %c0_i32_0 = arith.constant 0 : i32
    %c0_i32_1 = arith.constant 0 : i32
    return %c0_i32, %c0_i32_0 : i32, i32
  }
  func.func @transform_5(%arg0: i32) -> (i32, i32) {
    %c0_i32 = arith.constant 0 : i32
    %c0_i32_0 = arith.constant 0 : i32
    %c0_i32_1 = arith.constant 0 : i32
    return %c0_i32, %c0_i32_0 : i32, i32
  }
  func.func @transform_6(%arg0: i32) -> (i32, i32) {
    %c0_i32 = arith.constant 0 : i32
    %c0_i32_0 = arith.constant 0 : i32
    %c0_i32_1 = arith.constant 0 : i32
    return %c0_i32, %c0_i32_0 : i32, i32
  }
  func.func @transform_7(%arg0: i32) -> (i32, i32) {
    %c0_i32 = arith.constant 0 : i32
    %c0_i32_0 = arith.constant 0 : i32
    return %arg0, %c0_i32 : i32, i32
  }
}

</mosaic_0001>

<bundles_post_ra>
// kernel: tpu_custom_call.1
= control target key start
LH: loop header
LB: loop body
LE: loop exit
PB: predicated region body
PF: predicated region fallthrough
CT: control target
= control target key end

     0   :  { %s1547_s0 = inlined_call_operand.vmem [shape: f32[8,1024], index: 0, kind: input, shape index: {}]   ;;  %s1548_s1 = inlined_call_operand.vmem [shape: f32[1024,64], index: 1, kind: input, shape index: {}]   ;;  %s1549_s2 = inlined_call_operand.vmem [shape: f32[1,64], index: 2, kind: input, shape index: {}]   ;;  %s1550_s3 = inlined_call_operand.vmem [shape: f32[64,64], index: 3, kind: input, shape index: {}]   ;;  %s1551_s4 = inlined_call_operand.vmem [shape: f32[1,64], index: 4, kind: input, shape index: {}]   ;;  %s1552_s5 = inlined_call_operand.vmem [shape: f32[64,8], index: 5, kind: input, shape index: {}]   ;;  %s1553_s6 = inlined_call_operand.vmem [shape: f32[1,8], index: 6, kind: input, shape index: {}]   ;;  %s1554_s7 = inlined_call_operand.hbm [shape: f32[8,8], index: 7, kind: output, shape index: {}]  }
   0x1   :  { %v51_v0 = vld [vmem:[%s1548_s1 + $0x80] sm:$0xff]  ;;  %v52_v1 = vld [vmem:[%s1548_s1 + $0x88] sm:$0xff]  ;;  %v53_v11 = vld [vmem:[%s1548_s1 + $0x90] sm:$0xff] }
   0x2   :  { %v35_v2 = vld [vmem:[%s1548_s1] sm:$0xff]  ;;  %v846_v3 = vpack.c.bf16 %v52_v1, %v51_v0  ;;  %v36_v4 = vld [vmem:[%s1548_s1 + $0x8] sm:$0xff]  ;;  %v54_v13 = vld [vmem:[%s1548_s1 + $0x98] sm:$0xff] }
   0x3   :  { %v83_v5 = vld [vmem:[%s1548_s1 + $0x180] sm:$0xff]  ;;  %v84_v6 = vld [vmem:[%s1548_s1 + $0x188] sm:$0xff]  ;;  %v848_v7 = vpack.c.bf16 %v36_v4, %v35_v2  ;;  %v37_v14 = vld [vmem:[%s1548_s1 + $0x10] sm:$0xff]  ;;  %v850_v16 = vpack.c.bf16 %v54_v13, %v53_v11 }
   0x4   :  { %v878_v8 = vpack.c.bf16 %v84_v6, %v83_v5  ;;  %v67_v9 = vld [vmem:[%s1548_s1 + $0x100] sm:$0xff]  ;;  %v68_v10 = vld [vmem:[%s1548_s1 + $0x108] sm:$0xff]  ;;  %847 = vmatprep.subr.bf16.mxu0 %v846_v3  ;;  %v38_v15 = vld [vmem:[%s1548_s1 + $0x18] sm:$0xff] }
   0x5   :  { %v880_v12 = vpack.c.bf16 %v68_v10, %v67_v9  ;;  %849 = vmatpush3.bf16.msra.mxu0 %v848_v7  ;;  %v852_v17 = vpack.c.bf16 %v38_v15, %v37_v14  ;;  %v85_v18 = vld [vmem:[%s1548_s1 + $0x190] sm:$0xff]  ;;  %v86_v19 = vld [vmem:[%s1548_s1 + $0x198] sm:$0xff]  ;;  %v55_v23 = vld [vmem:[%s1548_s1 + $0xa0] sm:$0xff] }
   0x6   :  { %879 = vmatprep.subr.bf16.mxu1 %v878_v8  ;;  %v69_v20 = vld [vmem:[%s1548_s1 + $0x110] sm:$0xff]  ;;  %v882_v21 = vpack.c.bf16 %v86_v19, %v85_v18  ;;  %v70_v22 = vld [vmem:[%s1548_s1 + $0x118] sm:$0xff]  ;;  %v56_v24 = vld [vmem:[%s1548_s1 + $0xa8] sm:$0xff]  ;;  %851 = vmatprep.subr.bf16.mxu0 %v850_v16 }
   0x7   :  { %881 = vmatpush3.bf16.msra.mxu1 %v880_v12  ;;  %v884_v25 = vpack.c.bf16 %v70_v22, %v69_v20  ;;  %v854_v26 = vpack.c.bf16 %v56_v24, %v55_v23  ;;  %v39_v27 = vld [vmem:[%s1548_s1 + $0x20] sm:$0xff]  ;;  %v40_v28 = vld [vmem:[%s1548_s1 + $0x28] sm:$0xff]  ;;  %v57_v35 = vld [vmem:[%s1548_s1 + $0xb0] sm:$0xff] }
   0x8   :  { %v87_v29 = vld [vmem:[%s1548_s1 + $0x1a0] sm:$0xff]  ;;  %883 = vmatprep.subr.bf16.mxu1 %v882_v21  ;;  %v88_v30 = vld [vmem:[%s1548_s1 + $0x1a8] sm:$0xff]  ;;  %v856_v33 = vpack.c.bf16 %v40_v28, %v39_v27  ;;  %v58_v36 = vld [vmem:[%s1548_s1 + $0xb8] sm:$0xff] }
   0x9   :  { %v71_v31 = vld [vmem:[%s1548_s1 + $0x120] sm:$0xff]  ;;  %v72_v32 = vld [vmem:[%s1548_s1 + $0x128] sm:$0xff]  ;;  %853 = vmatpush3.bf16.msra.mxu0 %v852_v17  ;;  %v886_v34 = vpack.c.bf16 %v88_v30, %v87_v29  ;;  %v41_v37 = vld [vmem:[%s1548_s1 + $0x30] sm:$0xff]  ;;  %v858_v39 = vpack.c.bf16 %v58_v36, %v57_v35 }
   0xa   :  { %855 = vmatprep.subr.bf16.mxu0 %v854_v26  ;;  %v888_v38 = vpack.c.bf16 %v72_v32, %v71_v31  ;;  %v42_v40 = vld [vmem:[%s1548_s1 + $0x38] sm:$0xff]  ;;  %v89_v41 = vld [vmem:[%s1548_s1 + $0x1b0] sm:$0xff]  ;;  %v59_v46 = vld [vmem:[%s1548_s1 + $0xc0] sm:$0xff] }
   0xb   :  { %885 = vmatpush3.bf16.msra.mxu1 %v884_v25  ;;  %v90_v42 = vld [vmem:[%s1548_s1 + $0x1b8] sm:$0xff]  ;;  %v73_v44 = vld [vmem:[%s1548_s1 + $0x130] sm:$0xff]  ;;  %v60_v47 = vld [vmem:[%s1548_s1 + $0xc8] sm:$0xff]  ;;  %v860_v48 = vpack.c.bf16 %v42_v40, %v41_v37 }
   0xc   :  { %887 = vmatprep.subr.bf16.mxu1 %v886_v34  ;;  %v890_v43 = vpack.c.bf16 %v90_v42, %v89_v41  ;;  %v74_v45 = vld [vmem:[%s1548_s1 + $0x138] sm:$0xff]  ;;  %v91_v49 = vld [vmem:[%s1548_s1 + $0x1c0] sm:$0xff]  ;;  %v92_v50 = vld [vmem:[%s1548_s1 + $0x1c8] sm:$0xff]  ;;  %v862_v52 = vpack.c.bf16 %v60_v47, %v59_v46 }
   0xd   :  { %857 = vmatpush3.bf16.msra.mxu0 %v856_v33  ;;  %v892_v51 = vpack.c.bf16 %v74_v45, %v73_v44  ;;  %v43_v53 = vld [vmem:[%s1548_s1 + $0x40] sm:$0xff]  ;;  %v44_v54 = vld [vmem:[%s1548_s1 + $0x48] sm:$0xff]  ;;  %v894_v56 = vpack.c.bf16 %v92_v50, %v91_v49  ;;  %v61_v58 = vld [vmem:[%s1548_s1 + $0xd0] sm:$0xff] }
   0xe   :  { %859 = vmatprep.subr.bf16.mxu0 %v858_v39  ;;  %v75_v55 = vld [vmem:[%s1548_s1 + $0x140] sm:$0xff]  ;;  %v76_v57 = vld [vmem:[%s1548_s1 + $0x148] sm:$0xff]  ;;  %v62_v59 = vld [vmem:[%s1548_s1 + $0xd8] sm:$0xff]  ;;  %v864_v62 = vpack.c.bf16 %v44_v54, %v43_v53 }
   0xf   :  { %889 = vmatpush3.bf16.msra.mxu1 %v888_v38  ;;  %v93_v60 = vld [vmem:[%s1548_s1 + $0x1d0] sm:$0xff]  ;;  %v94_v61 = vld [vmem:[%s1548_s1 + $0x1d8] sm:$0xff]  ;;  %v896_v63 = vpack.c.bf16 %v76_v57, %v75_v55  ;;  %v866_v0 = vpack.c.bf16 %v62_v59, %v61_v58  ;;  %v63_v6 = vld [vmem:[%s1548_s1 + $0xe0] sm:$0xff] }
  0x10   :  { %891 = vmatprep.subr.bf16.mxu1 %v890_v43  ;;  %v45_v1 = vld [vmem:[%s1548_s1 + $0x50] sm:$0xff]  ;;  %v46_v2 = vld [vmem:[%s1548_s1 + $0x58] sm:$0xff]  ;;  %v898_v4 = vpack.c.bf16 %v94_v61, %v93_v60  ;;  %v64_v7 = vld [vmem:[%s1548_s1 + $0xe8] sm:$0xff] }
  0x11   :  { %861 = vmatpush3.bf16.msra.mxu0 %v860_v48  ;;  %v77_v3 = vld [vmem:[%s1548_s1 + $0x150] sm:$0xff]  ;;  %v78_v5 = vld [vmem:[%s1548_s1 + $0x158] sm:$0xff]  ;;  %v95_v8 = vld [vmem:[%s1548_s1 + $0x1e0] sm:$0xff]  ;;  %v868_v10 = vpack.c.bf16 %v46_v2, %v45_v1  ;;  %v870_v14 = vpack.c.bf16 %v64_v7, %v63_v6 }
  0x12   :  { %863 = vmatprep.subr.bf16.mxu0 %v862_v52  ;;  %v96_v9 = vld [vmem:[%s1548_s1 + $0x1e8] sm:$0xff]  ;;  %v47_v11 = vld [vmem:[%s1548_s1 + $0x60] sm:$0xff]  ;;  %v900_v13 = vpack.c.bf16 %v78_v5, %v77_v3  ;;  %v65_v19 = vld [vmem:[%s1548_s1 + $0xf0] sm:$0xff] }
  0x13   :  { %893 = vmatpush3.bf16.msra.mxu1 %v892_v51  ;;  %v48_v12 = vld [vmem:[%s1548_s1 + $0x68] sm:$0xff]  ;;  %v79_v15 = vld [vmem:[%s1548_s1 + $0x160] sm:$0xff]  ;;  %v902_v18 = vpack.c.bf16 %v96_v9, %v95_v8  ;;  %v66_v20 = vld [vmem:[%s1548_s1 + $0xf8] sm:$0xff] }
  0x14   :  { %895 = vmatprep.subr.bf16.mxu1 %v894_v56  ;;  %v80_v16 = vld [vmem:[%s1548_s1 + $0x168] sm:$0xff]  ;;  %v30_v21 = vld [vmem:[%s1547_s0 + $0x18] sm:$0xff]  ;;  %v97_v22 = vld [vmem:[%s1548_s1 + $0x1f0] sm:$0xff]  ;;  %v872_v24 = vpack.c.bf16 %v48_v12, %v47_v11  ;;  %v874_v26 = vpack.c.bf16 %v66_v20, %v65_v19 }
  0x15   :  { %865 = vmatpush3.bf16.msra.mxu0 %v864_v62  ;;  %v28_v17 = vld [vmem:[%s1547_s0 + $0x8] sm:$0xff]  ;;  %v98_v23 = vld [vmem:[%s1548_s1 + $0x1f8] sm:$0xff]  ;;  %304 = vmatprep.mubr.f32.mxu1 %v30_v21  ;;  %v904_v25 = vpack.c.bf16 %v80_v16, %v79_v15  ;;  %v49_v27 = vld [vmem:[%s1548_s1 + $0x70] sm:$0xff] }
  0x16   :  { %867 = vmatprep.subr.bf16.mxu0 %v866_v0  ;;  %234 = vmatprep.mubr.f32.mxu0 %v28_v17  ;;  %v50_v28 = vld [vmem:[%s1548_s1 + $0x78] sm:$0xff]  ;;  %v81_v29 = vld [vmem:[%s1548_s1 + $0x170] sm:$0xff]  ;;  %v906_v30 = vpack.c.bf16 %v98_v23, %v97_v22  ;;  %v115_v32 = vld [vmem:[%s1548_s1 + $0x280] sm:$0xff] }
  0x17   :  { %897 = vmatpush3.bf16.msra.mxu1 %v896_v63  ;;  %v82_v31 = vld [vmem:[%s1548_s1 + $0x178] sm:$0xff]  ;;  %v116_v33 = vld [vmem:[%s1548_s1 + $0x288] sm:$0xff]  ;;  %v147_v34 = vld [vmem:[%s1548_s1 + $0x380] sm:$0xff]  ;;  %v876_v36 = vpack.c.bf16 %v50_v28, %v49_v27 }
  0x18   :  { %899 = vmatprep.subr.bf16.mxu1 %v898_v4  ;;  %v148_v35 = vld [vmem:[%s1548_s1 + $0x388] sm:$0xff]  ;;  %v908_v37 = vpack.c.bf16 %v82_v31, %v81_v29  ;;  %v910_v38 = vpack.c.bf16 %v116_v33, %v115_v32  ;;  %v99_v39 = vld [vmem:[%s1548_s1 + $0x200] sm:$0xff]  ;;  %v117_v44 = vld [vmem:[%s1548_s1 + $0x290] sm:$0xff] }
  0x19   :  { %869 = vmatpush3.bf16.msra.mxu0 %v868_v10  ;;  %v100_v40 = vld [vmem:[%s1548_s1 + $0x208] sm:$0xff]  ;;  %v131_v41 = vld [vmem:[%s1548_s1 + $0x300] sm:$0xff]  ;;  %v942_v42 = vpack.c.bf16 %v148_v35, %v147_v34  ;;  %v118_v45 = vld [vmem:[%s1548_s1 + $0x298] sm:$0xff] }
  0x1a   :  { %871 = vmatprep.subr.bf16.mxu0 %v870_v14  ;;  %v132_v43 = vld [vmem:[%s1548_s1 + $0x308] sm:$0xff]  ;;  %v149_v46 = vld [vmem:[%s1548_s1 + $0x390] sm:$0xff]  ;;  %v150_v47 = vld [vmem:[%s1548_s1 + $0x398] sm:$0xff]  ;;  %v912_v49 = vpack.c.bf16 %v100_v40, %v99_v39  ;;  %v914_v52 = vpack.c.bf16 %v118_v45, %v117_v44 }
  0x1b   :  { %901 = vmatpush3.bf16.msra.mxu1 %v900_v13  ;;  %v27_v48 = vld [vmem:[%s1547_s0] sm:$0xff]  ;;  %v29_v50 = vld [vmem:[%s1547_s0 + $0x10] sm:$0xff]  ;;  %v944_v51 = vpack.c.bf16 %v132_v43, %v131_v41  ;;  %v102_v54 = vld [vmem:[%s1548_s1 + $0x218] sm:$0xff]  ;;  %v946_v56 = vpack.c.bf16 %v150_v47, %v149_v46 }
  0x1c   :  { %903 = vmatprep.subr.bf16.mxu1 %v902_v18  ;;  %v101_v53 = vld [vmem:[%s1548_s1 + $0x210] sm:$0xff]  ;;  %v134_v57 = vld [vmem:[%s1548_s1 + $0x318] sm:$0xff]  ;;  %v119_v58 = vld [vmem:[%s1548_s1 + $0x2a0] sm:$0xff] }
  0x1d   :  { %873 = vmatpush3.bf16.msra.mxu0 %v872_v24  ;;  %v133_v55 = vld [vmem:[%s1548_s1 + $0x310] sm:$0xff]  ;;  %v120_v59 = vld [vmem:[%s1548_s1 + $0x2a8] sm:$0xff]  ;;  %v151_v60 = vld [vmem:[%s1548_s1 + $0x3a0] sm:$0xff]  ;;  %v916_v62 = vpack.c.bf16 %v102_v54, %v101_v53 }
  0x1e   :  { %875 = vmatprep.subr.bf16.mxu0 %v874_v26  ;;  %v152_v61 = vld [vmem:[%s1548_s1 + $0x3a8] sm:$0xff]  ;;  %v948_v63 = vpack.c.bf16 %v134_v57, %v133_v55  ;;  %v918_v0 = vpack.c.bf16 %v120_v59, %v119_v58  ;;  %v103_v1 = vld [vmem:[%s1548_s1 + $0x220] sm:$0xff]  ;;  %v121_v6 = vld [vmem:[%s1548_s1 + $0x2b0] sm:$0xff] }
  0x1f   :  { %905 = vmatpush3.bf16.msra.mxu1 %v904_v25  ;;  %v104_v2 = vld [vmem:[%s1548_s1 + $0x228] sm:$0xff]  ;;  %v135_v3 = vld [vmem:[%s1548_s1 + $0x320] sm:$0xff]  ;;  %v950_v4 = vpack.c.bf16 %v152_v61, %v151_v60  ;;  %v122_v7 = vld [vmem:[%s1548_s1 + $0x2b8] sm:$0xff] }
  0x20   :  { %907 = vmatprep.subr.bf16.mxu1 %v906_v30  ;;  %v136_v5 = vld [vmem:[%s1548_s1 + $0x328] sm:$0xff]  ;;  %v153_v8 = vld [vmem:[%s1548_s1 + $0x3b0] sm:$0xff]  ;;  %v154_v9 = vld [vmem:[%s1548_s1 + $0x3b8] sm:$0xff]  ;;  %v920_v10 = vpack.c.bf16 %v104_v2, %v103_v1  ;;  %v922_v12 = vpack.c.bf16 %v122_v7, %v121_v6 }
  0x21   :  { %877 = vmatpush3.bf16.msra.mxu0 %v876_v36  ;;  %v952_v11 = vpack.c.bf16 %v136_v5, %v135_v3  ;;  %v105_v13 = vld [vmem:[%s1548_s1 + $0x230] sm:$0xff]  ;;  %v106_v14 = vld [vmem:[%s1548_s1 + $0x238] sm:$0xff]  ;;  %v954_v16 = vpack.c.bf16 %v154_v9, %v153_v8  ;;  %v123_v18 = vld [vmem:[%s1548_s1 + $0x2c0] sm:$0xff] }
  0x22   :  { %911 = vmatprep.subr.bf16.mxu0 %v910_v38  ;;  %v137_v15 = vld [vmem:[%s1548_s1 + $0x330] sm:$0xff]  ;;  %v138_v17 = vld [vmem:[%s1548_s1 + $0x338] sm:$0xff]  ;;  %v124_v19 = vld [vmem:[%s1548_s1 + $0x2c8] sm:$0xff]  ;;  %v924_v22 = vpack.c.bf16 %v106_v14, %v105_v13 }
  0x23   :  { %909 = vmatpush3.bf16.msra.mxu1 %v908_v37  ;;  %v155_v20 = vld [vmem:[%s1548_s1 + $0x3c0] sm:$0xff]  ;;  %v156_v21 = vld [vmem:[%s1548_s1 + $0x3c8] sm:$0xff]  ;;  %v34_v25 = vld [vmem:[%s1547_s0 + $0x38] sm:$0xff]  ;;  %v956_v26 = vpack.c.bf16 %v138_v17, %v137_v15  ;;  %v926_v27 = vpack.c.bf16 %v124_v19, %v123_v18 }
  0x24   :  { %943 = vmatprep.subr.bf16.mxu1 %v942_v42  ;;  %235 = vmatmul.mubr.f32.vlgmr.msra.gmra.mrb[0].mxu0 %v27_v48  ;;  %v107_v23 = vld [vmem:[%s1548_s1 + $0x240] sm:$0xff]  ;;  %v32_v24 = vld [vmem:[%s1547_s0 + $0x28] sm:$0xff] }
  0x25   :  { %913 = vmatpush3.bf16.msra.mxu0 %v912_v49  ;;  %v108_v28 = vld [vmem:[%s1548_s1 + $0x248] sm:$0xff]  ;;  %v139_v29 = vld [vmem:[%s1548_s1 + $0x340] sm:$0xff] }
  0x26   :  { %305 = vmatmul.mubr.f32.vlgmr.msra.gmra.mrb[0].mxu1 %v29_v50  ;;  %915 = vmatprep.subr.bf16.mxu0 %v914_v52 }
  0x27   :  { %945 = vmatpush3.bf16.msra.mxu1 %v944_v51 }
  0x28   :  { %947 = vmatprep.subr.bf16.mxu1 %v946_v56 }
  0x29   :  { %917 = vmatpush3.bf16.msra.mxu0 %v916_v62 }
  0x2a   :  { %919 = vmatprep.subr.bf16.mxu0 %v918_v0 }
  0x2b   :  { %949 = vmatpush3.bf16.msra.mxu1 %v948_v63 }
  0x2c   :  { %951 = vmatprep.subr.bf16.mxu1 %v950_v4 }
  0x2d   :  { %921 = vmatpush3.bf16.msra.mxu0 %v920_v10 }
  0x2e   :  { %923 = vmatprep.subr.bf16.mxu0 %v922_v12 }
  0x2f   :  { %953 = vmatpush3.bf16.msra.mxu1 %v952_v11 }
  0x30   :  { %12 = vsyncpa [#allocation3], 0  ;;  %955 = vmatprep.subr.bf16.mxu1 %v954_v16  ;;  %v958_v30 = vpack.c.bf16 %v156_v21, %v155_v20  ;;  %v140_v31 = vld [vmem:[%s1548_s1 + $0x348] sm:$0xff]  ;;  %v125_v32 = vld [vmem:[%s1548_s1 + $0x2d0] sm:$0xff]  ;;  %374 = vmatprep.mubr.f32.mxu0 %v32_v24  ;;  %v928_v36 = vpack.c.bf16 %v108_v28, %v107_v23  ;;  %v1026_v11 = vmov 0.0|0.0   ;;  %vm1027_vm0 = vmmov 0  }
  0x31   :  { %v126_v33 = vld [vmem:[%s1548_s1 + $0x2d8] sm:$0xff]  ;;  %v157_v34 = vld [vmem:[%s1548_s1 + $0x3d0] sm:$0xff]  ;;  %444 = vmatprep.mubr.f32.mxu1 %v34_v25  ;;  %925 = vmatpush3.bf16.msra.mxu0 %v924_v22  ;;  %v960_v37 = vpack.c.bf16 %v140_v31, %v139_v29  ;;  %v127_v44 = vld [vmem:[%s1548_s1 + $0x2e0] sm:$0xff]  ;;  %v1028_v21 = vmov 0.0   ;;  %vm466_vm1 = vcmask 523264   ;;  %s1029_s29 = smov [#allocation2]  }
  0x32   :  { %v158_v35 = vld [vmem:[%s1548_s1 + $0x3d8] sm:$0xff]  ;;  %927 = vmatprep.subr.bf16.mxu0 %v926_v27  ;;  %v930_v38 = vpack.c.bf16 %v126_v33, %v125_v32  ;;  %v109_v39 = vld [vmem:[%s1548_s1 + $0x250] sm:$0xff]  ;;  %v128_v45 = vld [vmem:[%s1548_s1 + $0x2e8] sm:$0xff]  ;;  %s637_s30 = sshll.u32 %s1029_s29, 4  ;;  %vm629_vm2 = vcmask 64512   ;;  %s638_s30 = int_to_ptr.vmem [resolvable:$true] %s637_s30 }
  0x33   :  { %957 = vmatpush3.bf16.msra.mxu1 %v956_v26  ;;  %v110_v40 = vld [vmem:[%s1548_s1 + $0x258] sm:$0xff]  ;;  %v141_v41 = vld [vmem:[%s1548_s1 + $0x350] sm:$0xff]  ;;  %v962_v42 = vpack.c.bf16 %v158_v35, %v157_v34  ;;  %v159_v46 = vld [vmem:[%s1548_s1 + $0x3e0] sm:$0xff]  ;;  %v934_v50 = vpack.c.bf16 %v128_v45, %v127_v44  ;;  %p1007_p1 = scmp.lt.s32.totalorder %s638_s30, %s638_s30 }
  0x34   :  { %959 = vmatprep.subr.bf16.mxu1 %v958_v30  ;;  %v142_v43 = vld [vmem:[%s1548_s1 + $0x358] sm:$0xff]  ;;  %v160_v47 = vld [vmem:[%s1548_s1 + $0x3e8] sm:$0xff]  ;;  %v932_v48 = vpack.c.bf16 %v110_v40, %v109_v39  ;;  %v111_v51 = vld [vmem:[%s1548_s1 + $0x260] sm:$0xff] }
  0x35   :  { %929 = vmatpush3.bf16.msra.mxu0 %v928_v36  ;;  %v964_v49 = vpack.c.bf16 %v142_v43, %v141_v41  ;;  %v112_v52 = vld [vmem:[%s1548_s1 + $0x268] sm:$0xff]  ;;  %v143_v53 = vld [vmem:[%s1548_s1 + $0x360] sm:$0xff]  ;;  %v966_v54 = vpack.c.bf16 %v160_v47, %v159_v46  ;;  %v129_v56 = vld [vmem:[%s1548_s1 + $0x2f0] sm:$0xff] }
  0x36   :  { %931 = vmatprep.subr.bf16.mxu0 %v930_v38  ;;  %v144_v55 = vld [vmem:[%s1548_s1 + $0x368] sm:$0xff]  ;;  %v130_v57 = vld [vmem:[%s1548_s1 + $0x2f8] sm:$0xff]  ;;  %v161_v58 = vld [vmem:[%s1548_s1 + $0x3f0] sm:$0xff]  ;;  %v936_v60 = vpack.c.bf16 %v112_v52, %v111_v51 }
  0x37   :  { %961 = vmatpush3.bf16.msra.mxu1 %v960_v37  ;;  %v162_v59 = vld [vmem:[%s1548_s1 + $0x3f8] sm:$0xff]  ;;  %v968_v61 = vpack.c.bf16 %v144_v55, %v143_v53  ;;  %v938_v62 = vpack.c.bf16 %v130_v57, %v129_v56  ;;  %v113_v63 = vld [vmem:[%s1548_s1 + $0x270] sm:$0xff]  ;;  %v31_v6 = vld [vmem:[%s1547_s0 + $0x20] sm:$0xff] }
  0x38   :  { %963 = vmatprep.subr.bf16.mxu1 %v962_v42  ;;  %v114_v0 = vld [vmem:[%s1548_s1 + $0x278] sm:$0xff]  ;;  %v970_v1 = vpack.c.bf16 %v162_v59, %v161_v58  ;;  %v145_v2 = vld [vmem:[%s1548_s1 + $0x370] sm:$0xff]  ;;  %v451_v8 = vld [vmem:[%s1550_s3] sm:$0xff] }
  0x39   :  { %933 = vmatpush3.bf16.msra.mxu0 %v932_v48  ;;  %v146_v3 = vld [vmem:[%s1548_s1 + $0x378] sm:$0xff]  ;;  %v940_v4 = vpack.c.bf16 %v114_v0, %v113_v63  ;;  %v33_v7 = vld [vmem:[%s1547_s0 + $0x30] sm:$0xff]  ;;  %v452_v9 = vld [vmem:[%s1550_s3 + $0x8] sm:$0xff] }
  0x3a   :  { %935 = vmatprep.subr.bf16.mxu0 %v934_v50  ;;  %v972_v5 = vpack.c.bf16 %v146_v3, %v145_v2  ;;  %v453_v10 = vld [vmem:[%s1550_s3 + $0x10] sm:$0xff]  ;;  %v975_v12 = vpack.c.bf16 %v452_v9, %v451_v8  ;;  %v454_v13 = vld [vmem:[%s1550_s3 + $0x18] sm:$0xff]  ;;  %v455_v15 = vld [vmem:[%s1550_s3 + $0x20] sm:$0xff] }
  0x3b   :  { %965 = vmatpush3.bf16.msra.mxu1 %v964_v49  ;;  %v978_v14 = vpack.c.bf16 %v454_v13, %v453_v10  ;;  %v456_v16 = vld [vmem:[%s1550_s3 + $0x28] sm:$0xff]  ;;  %v457_v18 = vld [vmem:[%s1550_s3 + $0x30] sm:$0xff]  ;;  %v458_v19 = vld [vmem:[%s1550_s3 + $0x38] sm:$0xff] }
  0x3c   :  { %967 = vmatprep.subr.bf16.mxu1 %v966_v54  ;;  %v981_v17 = vpack.c.bf16 %v456_v16, %v455_v15  ;;  %v984_v20 = vpack.c.bf16 %v458_v19, %v457_v18  ;;  %v541_v22 = vld [vmem:[%s1552_s5] sm:$0xff]  ;;  %v542_v23 = vld [vmem:[%s1552_s5 + $0x8] sm:$0xff]  ;;  %v543_v24 = vld [vmem:[%s1552_s5 + $0x10] sm:$0xff] }
  0x3d   :  { %937 = vmatpush3.bf16.msra.mxu0 %v936_v60  ;;  %v987_v25 = vpack.c.bf16 %v542_v23, %v541_v22  ;;  %v544_v26 = vld [vmem:[%s1552_s5 + $0x18] sm:$0xff]  ;;  %v545_v28 = vld [vmem:[%s1552_s5 + $0x20] sm:$0xff]  ;;  %v546_v29 = vld [vmem:[%s1552_s5 + $0x28] sm:$0xff] }
  0x3e   :  { %939 = vmatprep.subr.bf16.mxu0 %v938_v62  ;;  %v990_v27 = vpack.c.bf16 %v544_v26, %v543_v24  ;;  %v993_v30 = vpack.c.bf16 %v546_v29, %v545_v28  ;;  %v645_v32 = vld [vmem:[%s1549_s2] ss:$0 sm:$0xff]  ;;  %v547_v49 = vld [vmem:[%s1552_s5 + $0x30] sm:$0xff]  ;;  %v548_v50 = vld [vmem:[%s1552_s5 + $0x38] sm:$0xff]  ;;  %s1002_s5 = scalar_lea.vmem %s638_s30, 128 }
  0x3f   :  { %969 = vmatpush3.bf16.msra.mxu1 %v968_v61  ;;  %v996_v51 = vpack.c.bf16 %v548_v50, %v547_v49  ;;  %v646_v52 = vld [vmem:[%s1551_s4] ss:$0 sm:$0xff]  ;;  %p1003_p0 = scmp.ne.s32.totalorder %s638_s30, %s1002_s5  ;;  %p1008_p2 = scmp.lt.s32.totalorder %s1002_s5, %s1002_s5 }
  0x40   :  { %971 = vmatprep.subr.bf16.mxu1 %v970_v1  ;;  %v648_v57 = vld [vmem:[%s1553_s6] ss:$0 sm:$0xff] }
  0x41   :  { %941 = vmatpush3.bf16.msra.mxu0 %v940_v4  ;;  %p1009_p3 = por %p1008_p2, %p1007_p1 }
  0x42   :  { %974 = vmatprep.subr.bf16.mxu0 %v1026_v11 }
  0x43   :  { %973 = vmatpush3.bf16.msra.mxu1 %v972_v5  ;;  %p1010_p4 = pnand %p1009_p3, %p1003_p0 }
  0x44   :  { %375 = vmatmul.mubr.f32.vlgmr.msra.gmra.mrb[2].mxu0 %v31_v6  ;;  %986 = vmatprep.subr.bf16.mxu1 %v1026_v11 }
  0x45   :  { %976 = vmatpush3.bf16.msra.mxu0 %v975_v12  ;;  %824 = vmatprep.mubr.msk.f32.mxu0 %vm1027_vm0, %v1028_v21 }
  0x46   :  { %445 = vmatmul.mubr.f32.vlgmr.msra.gmra.mrb[2].mxu1 %v33_v7  ;;  %977 = vmatprep.subr.bf16.mxu0 %v1026_v11 }
  0x47   :  { %843 = vmatprep.mubr.msk.f32.mxu1 %vm1027_vm0, %v1028_v21  ;;  %988 = vmatpush3.bf16.msra.mxu1 %v987_v25 }
  0x48   :  { %989 = vmatprep.subr.bf16.mxu1 %v1026_v11 }
  0x49   :  { %979 = vmatpush3.bf16.msra.mxu0 %v978_v14 }
  0x4a   :  { %980 = vmatprep.subr.bf16.mxu0 %v1026_v11 }
  0x4b   :  { %991 = vmatpush3.bf16.msra.mxu1 %v990_v27 }
  0x4c   :  { %992 = vmatprep.subr.bf16.mxu1 %v1026_v11 }
  0x4d   :  { %982 = vmatpush3.bf16.msra.mxu0 %v981_v17 }
  0x4e   :  { %983 = vmatprep.subr.bf16.mxu0 %v1026_v11 }
  0x4f   :  { %994 = vmatpush3.bf16.msra.mxu1 %v993_v30 }
  0x50   :  { %995 = vmatprep.subr.bf16.mxu1 %v1026_v11 }
  0x51   :  { %985 = vmatpush3.bf16.msra.mxu0 %v984_v20 }
  0x53   :  { %997 = vmatpush3.bf16.msra.mxu1 %v996_v51 }
  0xf7   :  { %v682_v31 = vpop.f32.mrb[0].mxu0 }
  0xf8   :  { %v683_v33 = vpop.f32.mrb[1].mxu0 }
  0xf9   :  { %v717_v34 = vpop.f32.mrb[0].mxu1  ;;  %v684_v35 = vadd.f32 %v683_v33, %v682_v31 }
  0xfa   :  { %v718_v36 = vpop.f32.mrb[1].mxu1 }
  0xfb   :  { %v719_v37 = vadd.f32 %v718_v36, %v717_v34  ;;  %v237_v38 = vadd.f32 %v684_v35, %v645_v32 }
  0xfd   :  { %v307_v39 = vadd.f32 %v719_v37, %v237_v38 }
 0x117   :  { %v752_v40 = vpop.f32.mrb[2].mxu0 }
 0x118   :  { %v753_v41 = vpop.f32.mrb[3].mxu0 }
 0x119   :  { %v787_v42 = vpop.f32.mrb[2].mxu1  ;;  %v754_v43 = vadd.f32 %v753_v41, %v752_v40 }
 0x11a   :  { %v788_v44 = vpop.f32.mrb[3].mxu1 }
 0x11b   :  { %v789_v45 = vadd.f32 %v788_v44, %v787_v42  ;;  %v377_v46 = vadd.f32 %v754_v43, %v307_v39 }
 0x11d   :  { %v447_v47 = vadd.f32 %v789_v45, %v377_v46 }
 0x11f   :  { %v450_v48 = vmax.f32 %v447_v47, 0.0 }
 0x121   :  { %825 = vmatmul.mubr.msk.f32.vlgmr.msra.gmra.mrb[4].mxu0 %vm466_vm1, %v450_v48 }
 0x1f4   :  { %v536_v53 = vpop.f32.mrb[4].mxu0 }
 0x1f5   :  { %v537_v54 = vadd.f32 %v646_v52, %v536_v53  ;;  %v826_v55 = vpop.f32.mrb[5].mxu0 }
 0x1f7   :  { %v540_v56 = vmax.f32 %v537_v54, 0.0 }
 0x1f9   :  { %844 = vmatmul.mubr.msk.f32.vlgmr.msra.gmra.mrb[4].mxu1 %vm466_vm1, %v540_v56 }
 0x2cc   :  { %v625_v58 = vpop.f32.mrb[4].mxu1 }
 0x2cd   :  { %v626_v59 = vadd.f32 %v648_v57, %v625_v58  ;;  %v845_v60 = vpop.f32.mrb[5].mxu1 }
 0x2cf   :  { %630 = vst.msk [vmem:[#allocation2] sm:$0xff] %vm629_vm2, %v626_v59 }
 0x2d0   :  { %1013 = shalt.err (!%p1010_p4)
}
 0x2d1   :  { %s1014_s9 = scalar_lea.hbm %s1554_s7, 128 }
 0x2d2   :  { %p1015_p5 = scmp.ne.s32.totalorder %s1554_s7, %s1014_s9  ;;  %p1018_p6 = scmp.lt.u32.totalorder %s1014_s9, %s1554_s7 }
 0x2d4   :  { %p1020_p7 = pnand %p1018_p6, %p1015_p5 }
 0x2d6   :  { %1023 = shalt.err (!%p1020_p7)
}
 0x2d7   :  { %640 = dma.vmem_to_hbm [thread:$0]  %s638_s30, 128, %s1554_s7, [#allocation3]  }
 0x2d8   :  { %1024 = dma.done.wait [#allocation3], 128  }
 0x2d9   :  { %1025 = vsyncadd [#allocation3], 4294967168 }
 0x2da   :  { %644 = vsyncpa [#allocation3], 1 }

</bundles_post_ra>
